<compile_context>
chip_gen: v7x
topology: tpu7x:2x2x1
jax: 0.10.0
libtpu: 0.0.40
codegen_flags: <defaults>
</compile_context>

<pallas_src>
import jax
import jax.numpy as jnp
from jax import lax
from jax.experimental import pallas as pl
from jax.experimental.pallas import tpu as pltpu


def rnn_kernel(x_ref, wih1_ref, b1_ref, whh1_ref, w2_ref, b2_ref,
               wfc_ref, bfc_ref, out_ref, xproj_ref):
    TB, _ = x_ref.shape
    B, _ = out_ref.shape
    H = whh1_ref.shape[0]
    T = TB // B

    # --- hoisted layer-1 input projection (no recurrent dependency) ---
    # One well-shaped matmul replaces T tiny per-step matmuls; b1 (= b_ih1 +
    # b_hh1) is folded in once here instead of being broadcast every step.
    xproj_ref[...] = (
        jnp.dot(x_ref[...], wih1_ref[...], preferred_element_type=jnp.float32)
        + b1_ref[...])

    whh1 = whh1_ref[...]                            # (H, H)
    w2 = w2_ref[...]                                # (2H, H) = [wih2; whh2]
    b2 = jnp.broadcast_to(b2_ref[...], (B, H))      # pre-broadcast once

    h1_0 = jnp.zeros((B, H), jnp.float32)
    h2_0 = jnp.zeros((B, H), jnp.float32)

    def step(t, carry):
        h1, h2 = carry
        # layer 1: hoisted input projection + recurrent matmul
        xt = xproj_ref[pl.ds(t * B, B), :]          # (B, H)
        h1 = jnp.tanh(xt + jnp.dot(h1, whh1, preferred_element_type=jnp.float32))
        # layer 2: single fused matmul of [h1_new, h2_prev] @ [wih2; whh2]
        h12 = jnp.concatenate([h1, h2], axis=-1)    # (B, 2H)
        h2 = jnp.tanh(jnp.dot(h12, w2, preferred_element_type=jnp.float32) + b2)
        return (h1, h2)

    # T is small and static -> fully unroll so adjacent steps can co-issue.
    _, h2 = lax.fori_loop(0, T, step, (h1_0, h2_0), unroll=True)

    # fc on the last timestep of the last layer
    logits = (jnp.dot(h2, wfc_ref[...], preferred_element_type=jnp.float32)
              + bfc_ref[...])

    # log-softmax over classes (dim=1 of the (B, C) output)
    m = jnp.max(logits, axis=-1, keepdims=True)
    lse = jnp.log(jnp.sum(jnp.exp(logits - m), axis=-1, keepdims=True))
    out_ref[...] = logits - m - lse


def rnn_forward(x_btd, params):
    """x_btd: (B, T, D_in) float32.  Returns (B, num_classes) log-probs."""
    B, T, D = x_btd.shape
    H = params["whh1"].shape[0]
    C = params["wfc"].shape[1]

    # Layout plumbing only: time-major, then flatten (T, B) -> T*B so the
    # kernel can do one hoisted input-projection matmul and slice per step.
    x_flat = jnp.transpose(x_btd, (1, 0, 2)).reshape(T * B, D)
    # Stack layer-2 input / recurrent weights once -> one fused matmul per step.
    w2 = jnp.concatenate([params["wih2"], params["whh2"]], axis=0)  # (2H, H)

    vmem = pl.BlockSpec(memory_space=pltpu.MemorySpace.VMEM)
    args = (x_flat, params["wih1"], params["b1"], params["whh1"], w2,
            params["b2"], params["wfc"], params["bfc"])

    return pl.pallas_call(
        rnn_kernel,
        out_shape=jax.ShapeDtypeStruct((B, C), jnp.float32),
        in_specs=[vmem] * len(args),
        out_specs=vmem,
        scratch_shapes=[pltpu.VMEM((T * B, H), jnp.float32)],
    )(*args)


def init_params(key, input_size, hidden_size, num_classes):
    """Deterministic init matching PyTorch shapes (weights stored transposed)."""
    k = 1.0 / jnp.sqrt(hidden_size)
    keys = jax.random.split(key, 9)
    u = lambda kk, shape: jax.random.uniform(kk, shape, jnp.float32, -k, k)
    return {
        # layer 0
        "wih1": u(keys[0], (input_size, hidden_size)),
        "whh1": u(keys[1], (hidden_size, hidden_size)),
        "b1":   u(keys[2], (1, hidden_size)) + u(keys[3], (1, hidden_size)),  # b_ih + b_hh
        # layer 1
        "wih2": u(keys[4], (hidden_size, hidden_size)),
        "whh2": u(keys[5], (hidden_size, hidden_size)),
        "b2":   u(keys[6], (1, hidden_size)) + u(keys[7], (1, hidden_size)),
        # fc
        "wfc":  u(keys[8], (hidden_size, num_classes)),
        "bfc":  jnp.zeros((1, num_classes), jnp.float32),
    }


def rnn_forward_ref(x_btd, params):
    """Pure-JAX reference (unfused, matches PyTorch semantics)."""
    B, T, _ = x_btd.shape
    H = params["whh1"].shape[0]
    h1 = jnp.zeros((B, H), jnp.float32)
    h2 = jnp.zeros((B, H), jnp.float32)
    for t in range(T):
        xt = x_btd[:, t, :]
        h1 = jnp.tanh(xt @ params["wih1"] + h1 @ params["whh1"] + params["b1"])
        h2 = jnp.tanh(h1 @ params["wih2"] + h2 @ params["whh2"] + params["b2"])
    logits = h2 @ params["wfc"] + params["bfc"]
    return jax.nn.log_softmax(logits, axis=1)


if __name__ == "__main__":
    # small shapes consistent with the module's forward
    B, T, D_in, H, C = 2, 8, 16, 32, 10

    key = jax.random.PRNGKey(0)
    kx, kp = jax.random.split(key)
    x = jax.random.normal(kx, (B, T, D_in), jnp.float32)
    params = init_params(kp, D_in, H, C)

    out = jax.block_until_ready(rnn_forward(x, params))
    ref = rnn_forward_ref(x, params)

    assert out.shape == (B, C)
    assert jnp.allclose(out, ref, atol=1e-5, rtol=1e-5)
    print("KERNEL_OK")
</pallas_src>

<mosaic_0001>
module attributes {stable_mosaic.version = 11 : i64} {
  func.func @rnn_kernel(%arg0: memref<16x16xf32, #tpu.memory_space<vmem>>, %arg1: memref<16x32xf32, #tpu.memory_space<vmem>>, %arg2: memref<1x32xf32, #tpu.memory_space<vmem>>, %arg3: memref<32x32xf32, #tpu.memory_space<vmem>>, %arg4: memref<64x32xf32, #tpu.memory_space<vmem>>, %arg5: memref<1x32xf32, #tpu.memory_space<vmem>>, %arg6: memref<32x10xf32, #tpu.memory_space<vmem>>, %arg7: memref<1x10xf32, #tpu.memory_space<vmem>>, %arg8: memref<2x10xf32, #tpu.memory_space<vmem>>, %arg9: memref<16x32xf32, #tpu.memory_space<vmem>>) attributes {dimension_semantics = [], scalar_prefetch = 0 : i64, scratch_operands = 1 : i64, tpu.core_type = #tpu.core_type<tc>} {
    %c0 = arith.constant 0 : index
    %c0_0 = arith.constant 0 : index
    %0 = vector.load %arg0[%c0, %c0_0] : memref<16x16xf32, #tpu.memory_space<vmem>>, vector<16x16xf32>
    %c0_1 = arith.constant 0 : index
    %c0_2 = arith.constant 0 : index
    %1 = vector.load %arg1[%c0_1, %c0_2] : memref<16x32xf32, #tpu.memory_space<vmem>>, vector<16x32xf32>
    %cst = arith.constant dense<0.000000e+00> : vector<16x32xf32>
    %2 = tpu.matmul %0, %1, %cst {dimension_numbers = #tpu.dot_dimension_numbers<[1], [0], [0], [1], [0, 0, 1, 1], [], []>} : vector<16x16xf32>, vector<16x32xf32>, vector<16x32xf32> -> vector<16x32xf32>
    %c0_3 = arith.constant 0 : index
    %c0_4 = arith.constant 0 : index
    %3 = vector.load %arg2[%c0_3, %c0_4] : memref<1x32xf32, #tpu.memory_space<vmem>>, vector<1x32xf32>
    %4 = vector.broadcast %3 : vector<1x32xf32> to vector<16x32xf32>
    %5 = arith.addf %2, %4 : vector<16x32xf32>
    %c0_5 = arith.constant 0 : index
    %c0_6 = arith.constant 0 : index
    %6 = vector.load %arg9[%c0_5, %c0_6] : memref<16x32xf32, #tpu.memory_space<vmem>>, vector<16x32xf32>
    tpu.vector_store %arg9[%c0_5, %c0_6], %5 {strides = array<i32>} : memref<16x32xf32, #tpu.memory_space<vmem>>, vector<16x32xf32>,
    %c0_7 = arith.constant 0 : index
    %c0_8 = arith.constant 0 : index
    %7 = vector.load %arg3[%c0_7, %c0_8] : memref<32x32xf32, #tpu.memory_space<vmem>>, vector<32x32xf32>
    %c0_9 = arith.constant 0 : index
    %c0_10 = arith.constant 0 : index
    %8 = vector.load %arg4[%c0_9, %c0_10] : memref<64x32xf32, #tpu.memory_space<vmem>>, vector<64x32xf32>
    %c0_11 = arith.constant 0 : index
    %c0_12 = arith.constant 0 : index
    %9 = vector.load %arg5[%c0_11, %c0_12] : memref<1x32xf32, #tpu.memory_space<vmem>>, vector<1x32xf32>
    %10 = vector.shape_cast %9 : vector<1x32xf32> to vector<1x32xf32>
    %11 = vector.broadcast %10 : vector<1x32xf32> to vector<2x32xf32>
    %cst_13 = arith.constant 0.000000e+00 : f32
    %12 = vector.broadcast %cst_13 : f32 to vector<2x32xf32>
    %cst_14 = arith.constant 0.000000e+00 : f32
    %13 = vector.broadcast %cst_14 : f32 to vector<2x32xf32>
    %c0_i32 = arith.constant 0 : i32
    %c2_i32 = arith.constant 2 : i32
    %14 = arith.muli %c0_i32, %c2_i32 : i32
    %15 = arith.index_cast %14 : i32 to index
    %c0_15 = arith.constant 0 : index
    %16 = vector.load %arg9[%15, %c0_15] : memref<16x32xf32, #tpu.memory_space<vmem>>, vector<2x32xf32>
    %cst_16 = arith.constant dense<0.000000e+00> : vector<2x32xf32>
    %17 = tpu.matmul %12, %7, %cst_16 {dimension_numbers = #tpu.dot_dimension_numbers<[1], [0], [0], [1], [0, 0, 1, 1], [], []>} : vector<2x32xf32>, vector<32x32xf32>, vector<2x32xf32> -> vector<2x32xf32>
    %18 = arith.addf %16, %17 : vector<2x32xf32>
    %19 = math.tanh %18 : vector<2x32xf32>
    %20 = tpu.concatenate %19, %13 in 1 : vector<2x32xf32>, vector<2x32xf32> -> vector<2x64xf32>
    %cst_17 = arith.constant dense<0.000000e+00> : vector<2x32xf32>
    %21 = tpu.matmul %20, %8, %cst_17 {dimension_numbers = #tpu.dot_dimension_numbers<[1], [0], [0], [1], [0, 0, 1, 1], [], []>} : vector<2x64xf32>, vector<64x32xf32>, vector<2x32xf32> -> vector<2x32xf32>
    %22 = arith.addf %21, %11 : vector<2x32xf32>
    %23 = math.tanh %22 : vector<2x32xf32>
    %c1_i32 = arith.constant 1 : i32
    %c2_i32_18 = arith.constant 2 : i32
    %24 = arith.muli %c1_i32, %c2_i32_18 : i32
    %25 = arith.index_cast %24 : i32 to index
    %c0_19 = arith.constant 0 : index
    %26 = vector.load %arg9[%25, %c0_19] : memref<16x32xf32, #tpu.memory_space<vmem>>, vector<2x32xf32>
    %cst_20 = arith.constant dense<0.000000e+00> : vector<2x32xf32>
    %27 = tpu.matmul %19, %7, %cst_20 {dimension_numbers = #tpu.dot_dimension_numbers<[1], [0], [0], [1], [0, 0, 1, 1], [], []>} : vector<2x32xf32>, vector<32x32xf32>, vector<2x32xf32> -> vector<2x32xf32>
    %28 = arith.addf %26, %27 : vector<2x32xf32>
    %29 = math.tanh %28 : vector<2x32xf32>
    %30 = tpu.concatenate %29, %23 in 1 : vector<2x32xf32>, vector<2x32xf32> -> vector<2x64xf32>
    %cst_21 = arith.constant dense<0.000000e+00> : vector<2x32xf32>
    %31 = tpu.matmul %30, %8, %cst_21 {dimension_numbers = #tpu.dot_dimension_numbers<[1], [0], [0], [1], [0, 0, 1, 1], [], []>} : vector<2x64xf32>, vector<64x32xf32>, vector<2x32xf32> -> vector<2x32xf32>
    %32 = arith.addf %31, %11 : vector<2x32xf32>
    %33 = math.tanh %32 : vector<2x32xf32>
    %c2_i32_22 = arith.constant 2 : i32
    %c2_i32_23 = arith.constant 2 : i32
    %34 = arith.muli %c2_i32_22, %c2_i32_23 : i32
    %35 = arith.index_cast %34 : i32 to index
    %c0_24 = arith.constant 0 : index
    %36 = vector.load %arg9[%35, %c0_24] : memref<16x32xf32, #tpu.memory_space<vmem>>, vector<2x32xf32>
    %cst_25 = arith.constant dense<0.000000e+00> : vector<2x32xf32>
    %37 = tpu.matmul %29, %7, %cst_25 {dimension_numbers = #tpu.dot_dimension_numbers<[1], [0], [0], [1], [0, 0, 1, 1], [], []>} : vector<2x32xf32>, vector<32x32xf32>, vector<2x32xf32> -> vector<2x32xf32>
    %38 = arith.addf %36, %37 : vector<2x32xf32>
    %39 = math.tanh %38 : vector<2x32xf32>
    %40 = tpu.concatenate %39, %33 in 1 : vector<2x32xf32>, vector<2x32xf32> -> vector<2x64xf32>
    %cst_26 = arith.constant dense<0.000000e+00> : vector<2x32xf32>
    %41 = tpu.matmul %40, %8, %cst_26 {dimension_numbers = #tpu.dot_dimension_numbers<[1], [0], [0], [1], [0, 0, 1, 1], [], []>} : vector<2x64xf32>, vector<64x32xf32>, vector<2x32xf32> -> vector<2x32xf32>
    %42 = arith.addf %41, %11 : vector<2x32xf32>
    %43 = math.tanh %42 : vector<2x32xf32>
    %c3_i32 = arith.constant 3 : i32
    %c2_i32_27 = arith.constant 2 : i32
    %44 = arith.muli %c3_i32, %c2_i32_27 : i32
    %45 = arith.index_cast %44 : i32 to index
    %c0_28 = arith.constant 0 : index
    %46 = vector.load %arg9[%45, %c0_28] : memref<16x32xf32, #tpu.memory_space<vmem>>, vector<2x32xf32>
    %cst_29 = arith.constant dense<0.000000e+00> : vector<2x32xf32>
    %47 = tpu.matmul %39, %7, %cst_29 {dimension_numbers = #tpu.dot_dimension_numbers<[1], [0], [0], [1], [0, 0, 1, 1], [], []>} : vector<2x32xf32>, vector<32x32xf32>, vector<2x32xf32> -> vector<2x32xf32>
    %48 = arith.addf %46, %47 : vector<2x32xf32>
    %49 = math.tanh %48 : vector<2x32xf32>
    %50 = tpu.concatenate %49, %43 in 1 : vector<2x32xf32>, vector<2x32xf32> -> vector<2x64xf32>
    %cst_30 = arith.constant dense<0.000000e+00> : vector<2x32xf32>
    %51 = tpu.matmul %50, %8, %cst_30 {dimension_numbers = #tpu.dot_dimension_numbers<[1], [0], [0], [1], [0, 0, 1, 1], [], []>} : vector<2x64xf32>, vector<64x32xf32>, vector<2x32xf32> -> vector<2x32xf32>
    %52 = arith.addf %51, %11 : vector<2x32xf32>
    %53 = math.tanh %52 : vector<2x32xf32>
    %c4_i32 = arith.constant 4 : i32
    %c2_i32_31 = arith.constant 2 : i32
    %54 = arith.muli %c4_i32, %c2_i32_31 : i32
    %55 = arith.index_cast %54 : i32 to index
    %c0_32 = arith.constant 0 : index
    %56 = vector.load %arg9[%55, %c0_32] : memref<16x32xf32, #tpu.memory_space<vmem>>, vector<2x32xf32>
    %cst_33 = arith.constant dense<0.000000e+00> : vector<2x32xf32>
    %57 = tpu.matmul %49, %7, %cst_33 {dimension_numbers = #tpu.dot_dimension_numbers<[1], [0], [0], [1], [0, 0, 1, 1], [], []>} : vector<2x32xf32>, vector<32x32xf32>, vector<2x32xf32> -> vector<2x32xf32>
    %58 = arith.addf %56, %57 : vector<2x32xf32>
    %59 = math.tanh %58 : vector<2x32xf32>
    %60 = tpu.concatenate %59, %53 in 1 : vector<2x32xf32>, vector<2x32xf32> -> vector<2x64xf32>
    %cst_34 = arith.constant dense<0.000000e+00> : vector<2x32xf32>
    %61 = tpu.matmul %60, %8, %cst_34 {dimension_numbers = #tpu.dot_dimension_numbers<[1], [0], [0], [1], [0, 0, 1, 1], [], []>} : vector<2x64xf32>, vector<64x32xf32>, vector<2x32xf32> -> vector<2x32xf32>
    %62 = arith.addf %61, %11 : vector<2x32xf32>
    %63 = math.tanh %62 : vector<2x32xf32>
    %c5_i32 = arith.constant 5 : i32
    %c2_i32_35 = arith.constant 2 : i32
    %64 = arith.muli %c5_i32, %c2_i32_35 : i32
    %65 = arith.index_cast %64 : i32 to index
    %c0_36 = arith.constant 0 : index
    %66 = vector.load %arg9[%65, %c0_36] : memref<16x32xf32, #tpu.memory_space<vmem>>, vector<2x32xf32>
    %cst_37 = arith.constant dense<0.000000e+00> : vector<2x32xf32>
    %67 = tpu.matmul %59, %7, %cst_37 {dimension_numbers = #tpu.dot_dimension_numbers<[1], [0], [0], [1], [0, 0, 1, 1], [], []>} : vector<2x32xf32>, vector<32x32xf32>, vector<2x32xf32> -> vector<2x32xf32>
    %68 = arith.addf %66, %67 : vector<2x32xf32>
    %69 = math.tanh %68 : vector<2x32xf32>
    %70 = tpu.concatenate %69, %63 in 1 : vector<2x32xf32>, vector<2x32xf32> -> vector<2x64xf32>
    %cst_38 = arith.constant dense<0.000000e+00> : vector<2x32xf32>
    %71 = tpu.matmul %70, %8, %cst_38 {dimension_numbers = #tpu.dot_dimension_numbers<[1], [0], [0], [1], [0, 0, 1, 1], [], []>} : vector<2x64xf32>, vector<64x32xf32>, vector<2x32xf32> -> vector<2x32xf32>
    %72 = arith.addf %71, %11 : vector<2x32xf32>
    %73 = math.tanh %72 : vector<2x32xf32>
    %c6_i32 = arith.constant 6 : i32
    %c2_i32_39 = arith.constant 2 : i32
    %74 = arith.muli %c6_i32, %c2_i32_39 : i32
    %75 = arith.index_cast %74 : i32 to index
    %c0_40 = arith.constant 0 : index
    %76 = vector.load %arg9[%75, %c0_40] : memref<16x32xf32, #tpu.memory_space<vmem>>, vector<2x32xf32>
    %cst_41 = arith.constant dense<0.000000e+00> : vector<2x32xf32>
    %77 = tpu.matmul %69, %7, %cst_41 {dimension_numbers = #tpu.dot_dimension_numbers<[1], [0], [0], [1], [0, 0, 1, 1], [], []>} : vector<2x32xf32>, vector<32x32xf32>, vector<2x32xf32> -> vector<2x32xf32>
    %78 = arith.addf %76, %77 : vector<2x32xf32>
    %79 = math.tanh %78 : vector<2x32xf32>
    %80 = tpu.concatenate %79, %73 in 1 : vector<2x32xf32>, vector<2x32xf32> -> vector<2x64xf32>
    %cst_42 = arith.constant dense<0.000000e+00> : vector<2x32xf32>
    %81 = tpu.matmul %80, %8, %cst_42 {dimension_numbers = #tpu.dot_dimension_numbers<[1], [0], [0], [1], [0, 0, 1, 1], [], []>} : vector<2x64xf32>, vector<64x32xf32>, vector<2x32xf32> -> vector<2x32xf32>
    %82 = arith.addf %81, %11 : vector<2x32xf32>
    %83 = math.tanh %82 : vector<2x32xf32>
    %c7_i32 = arith.constant 7 : i32
    %c2_i32_43 = arith.constant 2 : i32
    %84 = arith.muli %c7_i32, %c2_i32_43 : i32
    %85 = arith.index_cast %84 : i32 to index
    %c0_44 = arith.constant 0 : index
    %86 = vector.load %arg9[%85, %c0_44] : memref<16x32xf32, #tpu.memory_space<vmem>>, vector<2x32xf32>
    %cst_45 = arith.constant dense<0.000000e+00> : vector<2x32xf32>
    %87 = tpu.matmul %79, %7, %cst_45 {dimension_numbers = #tpu.dot_dimension_numbers<[1], [0], [0], [1], [0, 0, 1, 1], [], []>} : vector<2x32xf32>, vector<32x32xf32>, vector<2x32xf32> -> vector<2x32xf32>
    %88 = arith.addf %86, %87 : vector<2x32xf32>
    %89 = math.tanh %88 : vector<2x32xf32>
    %90 = tpu.concatenate %89, %83 in 1 : vector<2x32xf32>, vector<2x32xf32> -> vector<2x64xf32>
    %cst_46 = arith.constant dense<0.000000e+00> : vector<2x32xf32>
    %91 = tpu.matmul %90, %8, %cst_46 {dimension_numbers = #tpu.dot_dimension_numbers<[1], [0], [0], [1], [0, 0, 1, 1], [], []>} : vector<2x64xf32>, vector<64x32xf32>, vector<2x32xf32> -> vector<2x32xf32>
    %92 = arith.addf %91, %11 : vector<2x32xf32>
    %93 = math.tanh %92 : vector<2x32xf32>
    %c8_i32 = arith.constant 8 : i32
    %c0_47 = arith.constant 0 : index
    %c0_48 = arith.constant 0 : index
    %94 = vector.load %arg6[%c0_47, %c0_48] : memref<32x10xf32, #tpu.memory_space<vmem>>, vector<32x10xf32>
    %cst_49 = arith.constant dense<0.000000e+00> : vector<2x10xf32>
    %95 = tpu.matmul %93, %94, %cst_49 {dimension_numbers = #tpu.dot_dimension_numbers<[1], [0], [0], [1], [0, 0, 1, 1], [], []>} : vector<2x32xf32>, vector<32x10xf32>, vector<2x10xf32> -> vector<2x10xf32>
    %c0_50 = arith.constant 0 : index
    %c0_51 = arith.constant 0 : index
    %96 = vector.load %arg7[%c0_50, %c0_51] : memref<1x10xf32, #tpu.memory_space<vmem>>, vector<1x10xf32>
    %97 = vector.broadcast %96 : vector<1x10xf32> to vector<2x10xf32>
    %98 = arith.addf %95, %97 : vector<2x10xf32>
    %cst_52 = arith.constant dense<0xFF800000> : vector<2xf32>
    %99 = vector.multi_reduction <maximumf>, %98, %cst_52 [1] : vector<2x10xf32> to vector<2xf32>
    %100 = vector.shape_cast %99 : vector<2xf32> to vector<2x1xf32>
    %101 = vector.broadcast %100 : vector<2x1xf32> to vector<2x10xf32>
    %102 = arith.subf %98, %101 : vector<2x10xf32>
    %103 = math.exp %102 : vector<2x10xf32>
    %cst_53 = arith.constant dense<0.000000e+00> : vector<2xf32>
    %104 = vector.multi_reduction <add>, %103, %cst_53 [1] : vector<2x10xf32> to vector<2xf32>
    %105 = vector.shape_cast %104 : vector<2xf32> to vector<2x1xf32>
    %106 = math.log %105 : vector<2x1xf32>
    %107 = vector.broadcast %100 : vector<2x1xf32> to vector<2x10xf32>
    %108 = arith.subf %98, %107 : vector<2x10xf32>
    %109 = vector.broadcast %106 : vector<2x1xf32> to vector<2x10xf32>
    %110 = arith.subf %108, %109 : vector<2x10xf32>
    %c0_54 = arith.constant 0 : index
    %c0_55 = arith.constant 0 : index
    %111 = vector.load %arg8[%c0_54, %c0_55] : memref<2x10xf32, #tpu.memory_space<vmem>>, vector<2x10xf32>
    tpu.vector_store %arg8[%c0_54, %c0_55], %110 {strides = array<i32>} : memref<2x10xf32, #tpu.memory_space<vmem>>, vector<2x10xf32>,
    return
  }
}

</mosaic_0001>

<bundles_post_ra>
// kernel: tpu_custom_call.1
= control target key start
LH: loop header
LB: loop body
LE: loop exit
PB: predicated region body
PF: predicated region fallthrough
CT: control target
= control target key end

     0   :  { %vm41_vm0 = vcmask 130048   ;;  %v2113_v4 = vmov 0.0|0.0   ;;  %vm2114_vm1 = vmmov 0   ;;  %v2115_v10 = vmov 0.0   ;;  %s2437_s0 = inlined_call_operand.vmem [shape: f32[16,16], index: 0, kind: input, shape index: {}]   ;;  %s2438_s1 = inlined_call_operand.vmem [shape: f32[16,32], index: 1, kind: input, shape index: {}]   ;;  %s2439_s2 = inlined_call_operand.vmem [shape: f32[1,32], index: 2, kind: input, shape index: {}]   ;;  %s2440_s3 = inlined_call_operand.vmem [shape: f32[32,32], index: 3, kind: input, shape index: {}]   ;;  %s2441_s4 = inlined_call_operand.vmem [shape: f32[64,32], index: 4, kind: input, shape index: {}]   ;;  %s2442_s5 = inlined_call_operand.vmem [shape: f32[1,32], index: 5, kind: input, shape index: {}]   ;;  %s2443_s6 = inlined_call_operand.vmem [shape: f32[32,10], index: 6, kind: input, shape index: {}]   ;;  %s2444_s7 = inlined_call_operand.vmem [shape: f32[1,10], index: 7, kind: input, shape index: {}]   ;;  %s2445_s8 = inlined_call_operand.hbm [shape: f32[2,10], index: 8, kind: output, shape index: {}]  }
   0x1   :  { %v32_v0 = vld [vmem:[%s2438_s1] sm:$0xff]  ;;  %v33_v1 = vld [vmem:[%s2438_s1 + $0x8] sm:$0xff]  ;;  %1898 = vmatprep.subr.bf16.mxu1 %v2113_v4  ;;  %v128_v8 = vld [vmem:[%s2440_s3 + $0x10] sm:$0xff]  ;;  %1651 = vmatprep.mubr.msk.f32.mxu1 %vm2114_vm1, %v2115_v10 }
   0x2   :  { %v30_v2 = vld [vmem:[%s2437_s0] sm:$0xff]  ;;  %v1894_v3 = vpack.c.bf16 %v33_v1, %v32_v0  ;;  %v127_v6 = vld [vmem:[%s2440_s3 + $0x8] sm:$0xff]  ;;  %v129_v9 = vld [vmem:[%s2440_s3 + $0x18] sm:$0xff] }
   0x3   :  { %1640 = vmatprep.mubr.msk.f32.mxu0 %vm41_vm0, %v30_v2  ;;  %v126_v5 = vld [vmem:[%s2440_s3] sm:$0xff] }
   0x4   :  { %v2180_v7 = vpack.c.bf16 %v127_v6, %v126_v5 }
   0x5   :  { %13 = vsyncpa [#allocation4], 0  ;;  %1895 = vmatprep.subr.bf16.mxu0 %v1894_v3  ;;  %v31_v11 = vld [vmem:[%s2437_s0 + $0x8] sm:$0xff]  ;;  %v2194_v12 = vpack.c.bf16 %v129_v9, %v128_v8  ;;  %v130_v13 = vld [vmem:[%s2441_s4] sm:$0xff]  ;;  %vm123_vm2 = vcmask 261120   ;;  %vm222_vm3 = vcmask 523264  }
   0x6   :  { %1897 = vmatpush3.bf16.msra.mxu0 %v1894_v3  ;;  %1900 = vmatpush3.bf16.msra.mxu1 %v2180_v7  ;;  %v131_v14 = vld [vmem:[%s2441_s4 + $0x8] sm:$0xff]  ;;  %v132_v16 = vld [vmem:[%s2441_s4 + $0x10] sm:$0xff]  ;;  %v133_v17 = vld [vmem:[%s2441_s4 + $0x18] sm:$0xff]  ;;  %s2116_s14 = smov 32   ;;  %vm1466_vm4 = vcmask 74752  }
   0x7   :  { %1901 = vmatprep.subr.bf16.mxu1 %v2113_v4  ;;  %1904 = vmatprep.subr.bf16.mxu0 %v2113_v4  ;;  %v2216_v15 = vpack.c.bf16 %v131_v14, %v130_v13  ;;  %v2226_v18 = vpack.c.bf16 %v133_v17, %v132_v16  ;;  %v134_v19 = vld [vmem:[%s2441_s4 + $0x20] sm:$0xff]  ;;  %v135_v20 = vld [vmem:[%s2441_s4 + $0x28] sm:$0xff]  ;;  %v136_v22 = vld [vmem:[%s2441_s4 + $0x30] sm:$0xff] }
   0x8   :  { %v2235_v21 = vpack.c.bf16 %v135_v20, %v134_v19  ;;  %v137_v23 = vld [vmem:[%s2441_s4 + $0x38] sm:$0xff]  ;;  %v1494_v25 = vld [vmem:[%s2439_s2] ss:$0 sm:$0xff] }
   0x9   :  { %1641 = vmatmul.mubr.msk.f32.vlgmr.msra.gmra.mrb[0].mxu0 %vm41_vm0, %v31_v11  ;;  %v2245_v24 = vpack.c.bf16 %v137_v23, %v136_v22  ;;  %v2277_v36 = vld [vmem:[%s2442_s5] ss:$0 sm:$0xff] }
   0xa   :  { %1903 = vmatpush3.bf16.msra.mxu1 %v2194_v12  ;;  %1670 = vmatprep.mubr.msk.f32.mxu0 %vm2114_vm1, %v2115_v10 }
   0xb   :  { %1916 = vmatprep.subr.bf16.mxu1 %v2113_v4  ;;  %1906 = vmatpush3.bf16.msra.mxu0 %v2216_v15 }
   0xc   :  { %1907 = vmatprep.subr.bf16.mxu0 %v2113_v4 }
   0xd   :  { %1652 = vmatmul.mubr.f32.vlgmr.msra.gmra.mrb[0].mxu1 %v2115_v10 }
   0xe   :  { %1918 = vmatpush3.bf16.msra.mxu1 %v2180_v7  ;;  %1681 = vmatprep.mubr.msk.f32.mxu1 %vm2114_vm1, %v2115_v10 }
   0xf   :  { %1919 = vmatprep.subr.bf16.mxu1 %v2113_v4  ;;  %1909 = vmatpush3.bf16.msra.mxu0 %v2226_v18 }
  0x10   :  { %1910 = vmatprep.subr.bf16.mxu0 %v2113_v4 }
  0x12   :  { %1921 = vmatpush3.bf16.msra.mxu1 %v2194_v12 }
  0x13   :  { %1922 = vmatprep.subr.bf16.mxu1 %v2113_v4  ;;  %1912 = vmatpush3.bf16.msra.mxu0 %v2235_v21 }
  0x14   :  { %1913 = vmatprep.subr.bf16.mxu0 %v2113_v4 }
  0x17   :  { %1915 = vmatpush3.bf16.msra.mxu0 %v2245_v24 }
  0x18   :  { %1934 = vmatprep.subr.bf16.mxu0 %v2113_v4 }
  0xdc   :  { %v1642_v26 = vpop.f32.mrb[0].mxu0 }
  0xdd   :  { %v120_v27 = vadd.f32 %v1642_v26, %v1494_v25  ;;  %v114_v28 = vpop.f32.mrb[1].mxu0 }
  0xde   :  { %v115_v29 = vadd.f32 %v1494_v25, %v114_v28 }
  0xdf   :  { %125 = vst.msk [vmem:[#allocation2 + $0x8] sm:$0xff] %vm123_vm2, %v120_v27 }
  0xe0   :  { %124 = vst.msk [vmem:[#allocation2] sm:$0xff] %vm123_vm2, %v115_v29  ;;  %v215_v30 = vpop.f32.mrb[0].mxu1 }
  0xe1   :  { %v1653_v31 = vpop.f32.mrb[1].mxu1 }
  0xe6   :  { %v762_v8 = vld [vmem:[#allocation2 + $0x8] sm:$0x3]  ;;  %v917_v25 = vld [vmem:[#allocation2 + $0xa] sm:$0x3] }
  0xe7   :  { %v145_v32 = vld [vmem:[#allocation2] sm:$0x3]  ;;  %v297_v37 = vld [vmem:[#allocation2 + $0x2] sm:$0x3]  ;;  %v452_v48 = vld [vmem:[#allocation2 + $0x4] sm:$0x3] }
  0xe8   :  { %v219_v33 = vadd.f32 %v215_v30, %v145_v32  ;;  %v607_v59 = vld [vmem:[#allocation2 + $0x6] sm:$0x3] }
  0xea   :  { %2053 = vtanh.f32 %v219_v33 }
  0xf4   :  { %v2054_v34 = vpop.eup %2053 }
  0xf5   :  { %1682 = vmatmul.mubr.msk.f32.vlgmr.msra.gmra.mrb[2].mxu1 %vm123_vm2, %v2054_v34  ;;  %v221_v35 = vsel %vm123_vm2, %v2054_v34, 0.0 }
  0xf6   :  { %1671 = vmatmul.mubr.msk.f32.vlgmr.msra.gmra.mrb[2].mxu0 %vm222_vm3, %v221_v35  ;;  %1924 = vmatpush3.bf16.msra.mxu1 %v2216_v15 }
  0xf7   :  { %1936 = vmatpush3.bf16.msra.mxu0 %v2180_v7  ;;  %1711 = vmatprep.mubr.msk.f32.mxu0 %vm2114_vm1, %v2115_v10 }
  0xf8   :  { %1937 = vmatprep.subr.bf16.mxu0 %v2113_v4  ;;  %1925 = vmatprep.subr.bf16.mxu1 %v2113_v4 }
  0xf9   :  { %1700 = vmatprep.mubr.msk.f32.mxu1 %vm2114_vm1, %v2115_v10 }
  0xfa   :  { %1927 = vmatpush3.bf16.msra.mxu1 %v2226_v18 }
  0xfb   :  { %1939 = vmatpush3.bf16.msra.mxu0 %v2194_v12  ;;  %1928 = vmatprep.subr.bf16.mxu1 %v2113_v4 }
  0xfc   :  { %1940 = vmatprep.subr.bf16.mxu0 %v2113_v4 }
  0xfe   :  { %1930 = vmatpush3.bf16.msra.mxu1 %v2235_v21 }
  0xff   :  { %1931 = vmatprep.subr.bf16.mxu1 %v2113_v4 }
 0x102   :  { %1933 = vmatpush3.bf16.msra.mxu1 %v2245_v24 }
 0x103   :  { %1952 = vmatprep.subr.bf16.mxu1 %v2113_v4 }
 0x1c8   :  { %v367_v38 = vpop.f32.mrb[2].mxu1 }
 0x1c9   :  { %v371_v39 = vadd.f32 %v367_v38, %v297_v37  ;;  %v292_v40 = vpop.f32.mrb[2].mxu0  ;;  %v1683_v41 = vpop.f32.mrb[3].mxu1  ;;  %v1072_v37 = vld [vmem:[#allocation2 + $0xc] sm:$0x3] }
 0x1ca   :  { %v293_v42 = vadd.f32 %v2277_v36, %v292_v40  ;;  %v1672_v43 = vpop.f32.mrb[3].mxu0 }
 0x1cb   :  { %2055 = vtanh.f32 %v371_v39 }
 0x1cc   :  { %2057 = vtanh.f32 %v293_v42 }
 0x1d5   :  { %v2056_v44 = vpop.eup %2055 }
 0x1d6   :  { %v2058_v45 = vpop.eup %2057  ;;  %1712 = vmatmul.mubr.msk.f32.vlgmr.msra.gmra.mrb[4].mxu0 %vm123_vm2, %v2056_v44 }
 0x1d7   :  { %374 = vrot.lane.b32.xlu0 %v2058_v45, %s2116_s14  ;;  %1942 = vmatpush3.bf16.msra.mxu0 %v2216_v15 }
 0x1d8   :  { %1943 = vmatprep.subr.bf16.mxu0 %v2113_v4  ;;  %1730 = vmatprep.mubr.msk.f32.mxu0 %vm2114_vm1, %v2115_v10 }
 0x1db   :  { %1945 = vmatpush3.bf16.msra.mxu0 %v2226_v18 }
 0x1dc   :  { %1946 = vmatprep.subr.bf16.mxu0 %v2113_v4 }
 0x1df   :  { %1948 = vmatpush3.bf16.msra.mxu0 %v2235_v21 }
 0x1e0   :  { %1949 = vmatprep.subr.bf16.mxu0 %v2113_v4 }
 0x1e3   :  { %1951 = vmatpush3.bf16.msra.mxu0 %v2245_v24 }
 0x1e4   :  { %1970 = vmatprep.subr.bf16.mxu0 %v2113_v4 }
 0x249   :  { %v375_v46 = vpop.permute.xlu0 %374 }
 0x24a   :  { %v377_v47 = vsel %vm123_vm2, %v2056_v44, %v375_v46 }
 0x24b   :  { %1701 = vmatmul.mubr.msk.f32.vlgmr.msra.gmra.mrb[4].mxu1 %vm222_vm3, %v377_v47 }
 0x24c   :  { %1954 = vmatpush3.bf16.msra.mxu1 %v2180_v7  ;;  %1741 = vmatprep.mubr.msk.f32.mxu1 %vm2114_vm1, %v2115_v10 }
 0x24d   :  { %1955 = vmatprep.subr.bf16.mxu1 %v2113_v4 }
 0x250   :  { %1957 = vmatpush3.bf16.msra.mxu1 %v2194_v12 }
 0x251   :  { %1958 = vmatprep.subr.bf16.mxu1 %v2113_v4 }
 0x2a9   :  { %v522_v49 = vpop.f32.mrb[4].mxu0 }
 0x2aa   :  { %v526_v50 = vadd.f32 %v522_v49, %v452_v48  ;;  %v1713_v51 = vpop.f32.mrb[5].mxu0  ;;  %v1227_v48 = vld [vmem:[#allocation2 + $0xe] sm:$0x3] }
 0x2ac   :  { %2059 = vtanh.f32 %v526_v50 }
 0x2b6   :  { %v2060_v52 = vpop.eup %2059 }
 0x2b7   :  { %1742 = vmatmul.mubr.msk.f32.vlgmr.msra.gmra.mrb[6].mxu1 %vm123_vm2, %v2060_v52 }
 0x2b8   :  { %1960 = vmatpush3.bf16.msra.mxu1 %v2216_v15  ;;  %1760 = vmatprep.mubr.msk.f32.mxu1 %vm2114_vm1, %v2115_v10 }
 0x2b9   :  { %1961 = vmatprep.subr.bf16.mxu1 %v2113_v4 }
 0x2bc   :  { %1963 = vmatpush3.bf16.msra.mxu1 %v2226_v18 }
 0x2bd   :  { %1964 = vmatprep.subr.bf16.mxu1 %v2113_v4 }
 0x2c0   :  { %1966 = vmatpush3.bf16.msra.mxu1 %v2235_v21 }
 0x2c1   :  { %1967 = vmatprep.subr.bf16.mxu1 %v2113_v4 }
 0x2c4   :  { %1969 = vmatpush3.bf16.msra.mxu1 %v2245_v24 }
 0x2c5   :  { %1988 = vmatprep.subr.bf16.mxu1 %v2113_v4 }
 0x31e   :  { %v447_v53 = vpop.f32.mrb[4].mxu1 }
 0x31f   :  { %v448_v54 = vadd.f32 %v2277_v36, %v447_v53  ;;  %v1702_v55 = vpop.f32.mrb[5].mxu1  ;;  %v1383_v53 = vld [vmem:[%s2443_s6 + $0x8] sm:$0xff] }
 0x321   :  { %2061 = vtanh.f32 %v448_v54  ;;  %v1384_v54 = vld [vmem:[%s2443_s6 + $0x10] sm:$0xff] }
 0x32b   :  { %v2062_v56 = vpop.eup %2061 }
 0x32c   :  { %529 = vrot.lane.b32.xlu0 %v2062_v56, %s2116_s14  ;;  %v1385_v56 = vld [vmem:[%s2443_s6 + $0x18] sm:$0xff] }
 0x38a   :  { %v677_v57 = vpop.f32.mrb[6].mxu1 }
 0x38b   :  { %v1743_v58 = vpop.f32.mrb[7].mxu1  ;;  %v681_v60 = vadd.f32 %v677_v57, %v607_v59  ;;  %v2046_v57 = vpack.c.bf16 %v1385_v56, %v1384_v54 }
 0x38d   :  { %2063 = vtanh.f32 %v681_v60 }
 0x397   :  { %v2064_v63 = vpop.eup %2063 }
 0x39e   :  { %v530_v61 = vpop.permute.xlu0 %529 }
 0x39f   :  { %v532_v62 = vsel %vm123_vm2, %v2060_v52, %v530_v61 }
 0x3a0   :  { %1731 = vmatmul.mubr.msk.f32.vlgmr.msra.gmra.mrb[6].mxu0 %vm222_vm3, %v532_v62  ;;  %v1513_v62 = vld [vmem:[%s2444_s7] ss:$0 sm:$0xff] }
 0x3a1   :  { %1972 = vmatpush3.bf16.msra.mxu0 %v2180_v7  ;;  %1771 = vmatprep.mubr.msk.f32.mxu0 %vm2114_vm1, %v2115_v10 }
 0x3a2   :  { %1973 = vmatprep.subr.bf16.mxu0 %v2113_v4 }
 0x3a5   :  { %1975 = vmatpush3.bf16.msra.mxu0 %v2194_v12 }
 0x3a6   :  { %1976 = vmatprep.subr.bf16.mxu0 %v2113_v4 }
 0x3a8   :  { %1772 = vmatmul.mubr.msk.f32.vlgmr.msra.gmra.mrb[8].mxu0 %vm123_vm2, %v2064_v63 }
 0x3a9   :  { %1978 = vmatpush3.bf16.msra.mxu0 %v2216_v15  ;;  %1790 = vmatprep.mubr.msk.f32.mxu0 %vm2114_vm1, %v2115_v10 }
 0x3aa   :  { %1979 = vmatprep.subr.bf16.mxu0 %v2113_v4 }
 0x3ad   :  { %1981 = vmatpush3.bf16.msra.mxu0 %v2226_v18 }
 0x3ae   :  { %1982 = vmatprep.subr.bf16.mxu0 %v2113_v4 }
 0x3b1   :  { %1984 = vmatpush3.bf16.msra.mxu0 %v2235_v21 }
 0x3b2   :  { %1985 = vmatprep.subr.bf16.mxu0 %v2113_v4 }
 0x3b5   :  { %1987 = vmatpush3.bf16.msra.mxu0 %v2245_v24 }
 0x3b6   :  { %2006 = vmatprep.subr.bf16.mxu0 %v2113_v4 }
 0x473   :  { %v602_v0 = vpop.f32.mrb[6].mxu0 }
 0x474   :  { %v603_v1 = vadd.f32 %v2277_v36, %v602_v0  ;;  %v1732_v2 = vpop.f32.mrb[7].mxu0 }
 0x476   :  { %2065 = vtanh.f32 %v603_v1 }
 0x47b   :  { %v832_v3 = vpop.f32.mrb[8].mxu0 }
 0x47c   :  { %v1773_v5 = vpop.f32.mrb[9].mxu0  ;;  %v836_v9 = vadd.f32 %v832_v3, %v762_v8 }
 0x47e   :  { %2067 = vtanh.f32 %v836_v9 }
 0x480   :  { %v2066_v6 = vpop.eup %2065 }
 0x481   :  { %684 = vrot.lane.b32.xlu1 %v2066_v6, %s2116_s14 }
 0x488   :  { %v2068_v14 = vpop.eup %2067 }
 0x4f3   :  { %v685_v11 = vpop.permute.xlu1 %684 }
 0x4f4   :  { %v687_v13 = vsel %vm123_vm2, %v2064_v63, %v685_v11 }
 0x4f5   :  { %1761 = vmatmul.mubr.msk.f32.vlgmr.msra.gmra.mrb[8].mxu1 %vm222_vm3, %v687_v13 }
 0x4f6   :  { %1990 = vmatpush3.bf16.msra.mxu1 %v2180_v7  ;;  %1801 = vmatprep.mubr.msk.f32.mxu1 %vm2114_vm1, %v2115_v10 }
 0x4f7   :  { %1991 = vmatprep.subr.bf16.mxu1 %v2113_v4 }
 0x4fa   :  { %1993 = vmatpush3.bf16.msra.mxu1 %v2194_v12 }
 0x4fb   :  { %1994 = vmatprep.subr.bf16.mxu1 %v2113_v4 }
 0x4fd   :  { %1802 = vmatmul.mubr.msk.f32.vlgmr.msra.gmra.mrb[10].mxu1 %vm123_vm2, %v2068_v14 }
 0x4fe   :  { %1996 = vmatpush3.bf16.msra.mxu1 %v2216_v15  ;;  %1820 = vmatprep.mubr.msk.f32.mxu1 %vm2114_vm1, %v2115_v10 }
 0x4ff   :  { %1997 = vmatprep.subr.bf16.mxu1 %v2113_v4 }
 0x502   :  { %1999 = vmatpush3.bf16.msra.mxu1 %v2226_v18 }
 0x503   :  { %2000 = vmatprep.subr.bf16.mxu1 %v2113_v4 }
 0x506   :  { %2002 = vmatpush3.bf16.msra.mxu1 %v2235_v21 }
 0x507   :  { %2003 = vmatprep.subr.bf16.mxu1 %v2113_v4 }
 0x50a   :  { %2005 = vmatpush3.bf16.msra.mxu1 %v2245_v24 }
 0x50b   :  { %2024 = vmatprep.subr.bf16.mxu1 %v2113_v4 }
 0x5c8   :  { %v757_v16 = vpop.f32.mrb[8].mxu1 }
 0x5c9   :  { %v758_v17 = vadd.f32 %v2277_v36, %v757_v16  ;;  %v1762_v19 = vpop.f32.mrb[9].mxu1 }
 0x5cb   :  { %2069 = vtanh.f32 %v758_v17 }
 0x5d0   :  { %v987_v20 = vpop.f32.mrb[10].mxu1 }
 0x5d1   :  { %v1803_v22 = vpop.f32.mrb[11].mxu1  ;;  %v991_v26 = vadd.f32 %v987_v20, %v917_v25 }
 0x5d3   :  { %2071 = vtanh.f32 %v991_v26 }
 0x5d5   :  { %v2070_v23 = vpop.eup %2069 }
 0x5d6   :  { %839 = vrot.lane.b32.xlu1 %v2070_v23, %s2116_s14 }
 0x5dd   :  { %v2072_v29 = vpop.eup %2071 }
 0x648   :  { %v840_v27 = vpop.permute.xlu1 %839 }
 0x649   :  { %v842_v28 = vsel %vm123_vm2, %v2068_v14, %v840_v27 }
 0x64a   :  { %1791 = vmatmul.mubr.msk.f32.vlgmr.msra.gmra.mrb[10].mxu0 %vm222_vm3, %v842_v28 }
 0x64b   :  { %2008 = vmatpush3.bf16.msra.mxu0 %v2180_v7  ;;  %1831 = vmatprep.mubr.msk.f32.mxu0 %vm2114_vm1, %v2115_v10 }
 0x64c   :  { %2009 = vmatprep.subr.bf16.mxu0 %v2113_v4 }
 0x64f   :  { %2011 = vmatpush3.bf16.msra.mxu0 %v2194_v12 }
 0x650   :  { %2012 = vmatprep.subr.bf16.mxu0 %v2113_v4 }
 0x652   :  { %1832 = vmatmul.mubr.msk.f32.vlgmr.msra.gmra.mrb[12].mxu0 %vm123_vm2, %v2072_v29 }
 0x653   :  { %2014 = vmatpush3.bf16.msra.mxu0 %v2216_v15  ;;  %1850 = vmatprep.mubr.msk.f32.mxu0 %vm2114_vm1, %v2115_v10 }
 0x654   :  { %2015 = vmatprep.subr.bf16.mxu0 %v2113_v4 }
 0x657   :  { %2017 = vmatpush3.bf16.msra.mxu0 %v2226_v18 }
 0x658   :  { %2018 = vmatprep.subr.bf16.mxu0 %v2113_v4 }
 0x65b   :  { %2020 = vmatpush3.bf16.msra.mxu0 %v2235_v21 }
 0x65c   :  { %2021 = vmatprep.subr.bf16.mxu0 %v2113_v4 }
 0x65f   :  { %2023 = vmatpush3.bf16.msra.mxu0 %v2245_v24 }
 0x660   :  { %2042 = vmatprep.subr.bf16.mxu0 %v2113_v4 }
 0x71d   :  { %v912_v30 = vpop.f32.mrb[10].mxu0 }
 0x71e   :  { %v913_v31 = vadd.f32 %v2277_v36, %v912_v30  ;;  %v1792_v32 = vpop.f32.mrb[11].mxu0 }
 0x720   :  { %2073 = vtanh.f32 %v913_v31 }
 0x725   :  { %v1142_v33 = vpop.f32.mrb[12].mxu0 }
 0x726   :  { %v1833_v34 = vpop.f32.mrb[13].mxu0  ;;  %v1146_v38 = vadd.f32 %v1142_v33, %v1072_v37 }
 0x728   :  { %2075 = vtanh.f32 %v1146_v38 }
 0x72a   :  { %v2074_v35 = vpop.eup %2073 }
 0x72b   :  { %994 = vrot.lane.b32.xlu0 %v2074_v35, %s2116_s14 }
 0x732   :  { %v2076_v41 = vpop.eup %2075 }
 0x79d   :  { %v995_v39 = vpop.permute.xlu0 %994 }
 0x79e   :  { %v997_v40 = vsel %vm123_vm2, %v2072_v29, %v995_v39 }
 0x79f   :  { %1821 = vmatmul.mubr.msk.f32.vlgmr.msra.gmra.mrb[12].mxu1 %vm222_vm3, %v997_v40 }
 0x7a0   :  { %2026 = vmatpush3.bf16.msra.mxu1 %v2180_v7  ;;  %1861 = vmatprep.mubr.msk.f32.mxu1 %vm2114_vm1, %v2115_v10 }
 0x7a1   :  { %2027 = vmatprep.subr.bf16.mxu1 %v2113_v4 }
 0x7a4   :  { %2029 = vmatpush3.bf16.msra.mxu1 %v2194_v12 }
 0x7a5   :  { %2030 = vmatprep.subr.bf16.mxu1 %v2113_v4 }
 0x7a7   :  { %1862 = vmatmul.mubr.msk.f32.vlgmr.msra.gmra.mrb[14].mxu1 %vm123_vm2, %v2076_v41 }
 0x7a8   :  { %2032 = vmatpush3.bf16.msra.mxu1 %v2216_v15  ;;  %1880 = vmatprep.mubr.msk.f32.mxu1 %vm2114_vm1, %v2115_v10 }
 0x7a9   :  { %2033 = vmatprep.subr.bf16.mxu1 %v2113_v4 }
 0x7ac   :  { %2035 = vmatpush3.bf16.msra.mxu1 %v2226_v18 }
 0x7ad   :  { %2036 = vmatprep.subr.bf16.mxu1 %v2113_v4 }
 0x7b0   :  { %2038 = vmatpush3.bf16.msra.mxu1 %v2235_v21 }
 0x7b1   :  { %2039 = vmatprep.subr.bf16.mxu1 %v2113_v4 }
 0x7b4   :  { %2041 = vmatpush3.bf16.msra.mxu1 %v2245_v24 }
 0x872   :  { %v1067_v7 = vpop.f32.mrb[12].mxu1 }
 0x873   :  { %v1068_v12 = vadd.f32 %v2277_v36, %v1067_v7  ;;  %v1822_v42 = vpop.f32.mrb[13].mxu1 }
 0x875   :  { %2077 = vtanh.f32 %v1068_v12 }
 0x87a   :  { %v1297_v15 = vpop.f32.mrb[14].mxu1 }
 0x87b   :  { %v1863_v43 = vpop.f32.mrb[15].mxu1  ;;  %v1301_v49 = vadd.f32 %v1297_v15, %v1227_v48 }
 0x87f   :  { %v2078_v44 = vpop.eup %2077 }
 0x880   :  { %1149 = vrot.lane.b32.xlu1 %v2078_v44, %s2116_s14 }
 0x8f2   :  { %v1150_v45 = vpop.permute.xlu1 %1149 }
 0x8f3   :  { %v1152_v18 = vsel %vm123_vm2, %v2076_v41, %v1150_v45 }
 0x8f4   :  { %1851 = vmatmul.mubr.msk.f32.vlgmr.msra.gmra.mrb[14].mxu0 %vm222_vm3, %v1152_v18 }
 0x8f5   :  { %1891 = vmatprep.mubr.msk.f32.mxu0 %vm2114_vm1, %v2115_v10  ;;  %v1382_v10 = vld [vmem:[%s2443_s6] sm:$0xff]  ;;  %s2117_s6 = smov [#allocation3]  }
 0x8f6   :  { %v2043_v55 = vpack.c.bf16 %v1383_v53, %v1382_v10  ;;  %s1486_s7 = sshll.u32 %s2117_s6, 4  ;;  %s1487_s7 = int_to_ptr.vmem [resolvable:$true] %s1486_s7 }
 0x8f7   :  { %s2089_s21 = scalar_lea.vmem %s1487_s7, 32  ;;  %p2094_p1 = scmp.lt.s32.totalorder %s1487_s7, %s1487_s7 }
 0x8f8   :  { %2044 = vmatpush3.bf16.msra.mxu0 %v2043_v55  ;;  %p2090_p0 = scmp.ne.s32.totalorder %s1487_s7, %s2089_s21  ;;  %p2095_p2 = scmp.lt.s32.totalorder %s2089_s21, %s2089_s21 }
 0x8f9   :  { %2045 = vmatprep.subr.bf16.mxu0 %v2113_v4 }
 0x8fa   :  { %p2096_p3 = por %p2095_p2, %p2094_p1 }
 0x8fc   :  { %2047 = vmatpush3.bf16.msra.mxu0 %v2046_v57  ;;  %p2097_p4 = pnand %p2096_p3, %p2090_p0 }
 0x9c7   :  { %v1222_v21 = vpop.f32.mrb[14].mxu0 }
 0x9c8   :  { %v1223_v24 = vadd.f32 %v2277_v36, %v1222_v21  ;;  %v1852_v46 = vpop.f32.mrb[15].mxu0 }
 0x9ca   :  { %2079 = vtanh.f32 %v1223_v24 }
 0x9cb   :  { %2081 = vtanh.f32 %v1301_v49 }
 0x9d4   :  { %v2080_v47 = vpop.eup %2079 }
 0x9d5   :  { %1304 = vrot.lane.b32.xlu0 %v2080_v47, %s2116_s14  ;;  %v2082_v50 = vpop.eup %2081 }
 0xa47   :  { %v1305_v51 = vpop.permute.xlu0 %1304 }
 0xa48   :  { %v1307_v52 = vsel %vm123_vm2, %v2082_v50, %v1305_v51 }
 0xa49   :  { %1881 = vmatmul.mubr.msk.f32.vlgmr.msra.gmra.mrb[16].mxu1 %vm222_vm3, %v1307_v52 }
 0xb1c   :  { %v1377_v58 = vpop.f32.mrb[16].mxu1 }
 0xb1d   :  { %v1378_v59 = vadd.f32 %v2277_v36, %v1377_v58  ;;  %v1882_v60 = vpop.f32.mrb[17].mxu1 }
 0xb1f   :  { %2083 = vtanh.f32 %v1378_v59 }
 0xb29   :  { %v2084_v61 = vpop.eup %2083 }
 0xb2a   :  { %1892 = vmatmul.mubr.msk.f32.vlgmr.msra.gmra.mrb[16].mxu0 %vm123_vm2, %v2084_v61 }
 0xbfd   :  { %v1462_v63 = vpop.f32.mrb[16].mxu0 }
 0xbfe   :  { %v1463_v0 = vadd.f32 %v1513_v62, %v1462_v63  ;;  %v1893_v1 = vpop.f32.mrb[17].mxu0 }
 0xc00   :  { %v1467_v2 = vsel %vm1466_vm4, %v1463_v0, -inf }
 0xc01   :  { %1468 = vmax.xlane.f32.xlu1 %v1467_v2 }
 0xc8e   :  { %v1469_v4 = vpop.xlane.xlu1 %1468 }
 0xc8f   :  { %v1470_v3 = vsub.f32 %v1463_v0, %v1469_v4 }
 0xc91   :  { %v1471_v5 = vmul.f32 1.442695, %v1470_v3 }
 0xc93   :  { %2085 = vpow2.f32 %v1471_v5 }
 0xc9d   :  { %v2086_v36 = vpop.eup %2085 }
 0xc9e   :  { %v1473_v6 = vsel %vm1466_vm4, %v2086_v36, 0.0 }
 0xc9f   :  { %1474 = vadd.xlane.f32.xlu0 %v1473_v6 }
 0xd2c   :  { %v1475_v8 = vpop.xlane.xlu0 %1474 }
 0xd2d   :  { %2087 = vlog2.f32 %v1475_v8 }
 0xd37   :  { %v2088_v9 = vpop.eup %2087 }
 0xd38   :  { %v1477_v11 = vmul.f32 0.6931472, %v2088_v9 }
 0xd3a   :  { %v1478_v13 = vsub.f32 %v1470_v3, %v1477_v11 }
 0xd3c   :  { %1479 = vst.msk [vmem:[#allocation3] sm:$0x3] %vm1466_vm4, %v1478_v13 }
 0xd3d   :  { %2100 = shalt.err (!%p2097_p4)
}
 0xd3e   :  { %s2101_s24 = scalar_lea.hbm %s2445_s8, 32 }
 0xd3f   :  { %p2102_p5 = scmp.ne.s32.totalorder %s2445_s8, %s2101_s24  ;;  %p2105_p6 = scmp.lt.u32.totalorder %s2101_s24, %s2445_s8 }
 0xd41   :  { %p2107_p7 = pnand %p2105_p6, %p2102_p5 }
 0xd43   :  { %2110 = shalt.err (!%p2107_p7)
}
 0xd44   :  { %1489 = dma.vmem_to_hbm [thread:$0]  %s1487_s7, 32, %s2445_s8, [#allocation4]  }
 0xd45   :  { %2111 = dma.done.wait [#allocation4], 32  }
 0xd46   :  { %2112 = vsyncadd [#allocation4], 4294967264 }
 0xd47   :  { %1493 = vsyncpa [#allocation4], 1 }

</bundles_post_ra>
